<compile_context>
chip_gen: v6e
topology: v6e:2x2x1
jax: 0.10.0
libtpu: 0.0.40
codegen_flags: <defaults>
</compile_context>

<pallas_src>
import functools
import math

import jax
import jax.numpy as jnp
from jax.experimental import pallas as pl
from jax.experimental.pallas import tpu as pltpu

LRELU_SLOPE = 0.2


# ---------------------------------------------------------------------------
# opt (stands in for config.read_arguments(train=True))
# ---------------------------------------------------------------------------
class Opt:
    def __init__(self):
        self.semantic_nc = 35            # "Unetseg_35"
        self.num_res_blocks = 6          # matches the hard-coded channel list
        self.no_balancing_inloss = False
        self.contain_dontcare_label = False
        self.no_spectral_norm = True     # sp_norm == identity wrapper
        self.no_EMA = True
        self.phase = 'train'
        self.gpu_ids = '-1'


# ---------------------------------------------------------------------------
# small helpers
# ---------------------------------------------------------------------------
def _round_up(x, m):
    return (x + m - 1) // m * m


def _pick_tile(total, cap, align):
    """Largest divisor of `total` that is <= cap and `align`-aligned, or full dim."""
    if total <= cap:
        return total
    for d in range(cap, 0, -1):
        if total % d == 0 and d % align == 0:
            return d
    return total


def _vmem_limit_bytes():
    # Derive from hardware and leave headroom: v7x only has 64 MiB physical
    # VMEM (so cap ~48 MiB there); v5e/v6e (128 MiB) can go higher.
    try:
        cap = int(pltpu.get_tpu_info().vmem_capacity_bytes)
        if cap <= 0:
            raise ValueError
        return min(cap * 3 // 4, 100 * 1024 * 1024)
    except Exception:
        return 48 * 1024 * 1024


_VMEM_LIMIT = _vmem_limit_bytes()


# ---------------------------------------------------------------------------
# Pallas conv kernel: single deep-K matmul per (batch, HW-tile), K tiled.
# ---------------------------------------------------------------------------
def _conv_matmul_kernel(x_ref, w_ref, b_ref, o_ref, acc_ref):
    k = pl.program_id(2)

    @pl.when(k == 0)
    def _():
        acc_ref[...] = jnp.zeros_like(acc_ref)

    acc_ref[...] += jnp.dot(x_ref[0], w_ref[...],
                            preferred_element_type=jnp.float32)

    @pl.when(k == pl.num_programs(2) - 1)
    def _():
        o_ref[0] = acc_ref[...] + b_ref[...]      # bias (1,Coutp) broadcast, single store


def conv2d(x_nhwc, w_hwio, b, *, padding, pre_lrelu=False):
    """Stride-1 cross-correlation, identical to torch.nn.Conv2d(stride=1, pad=padding)."""
    kh, kw, cin, cout = w_hwio.shape
    x = x_nhwc.astype(jnp.float32)
    if pre_lrelu:
        # LeakyReLU applied once per input tensor (leaky(0)=0, commutes with zero-pad).
        x = jnp.where(x >= 0, x, LRELU_SLOPE * x)
    if padding > 0:
        x = jnp.pad(x, ((0, 0), (padding, padding), (padding, padding), (0, 0)))
    n = x.shape[0]
    ho = x.shape[1] - kh + 1
    wo = x.shape[2] - kw + 1
    hw = ho * wo
    kq = kh * kw * cin

    # im2col built once: taps folded into the contraction axis (K = KT*Cin).
    if kh == 1 and kw == 1:
        patches = x.reshape(n, hw, cin)
    else:
        cols = [x[:, i:i + ho, j:j + wo, :] for i in range(kh) for j in range(kw)]
        patches = jnp.concatenate(cols, axis=-1).reshape(n, hw, kq)

    coutp = _round_up(cout, 128)                  # lane-dense output stores
    w2 = w_hwio.reshape(kq, cout)                 # (kh*kw*cin, cout) matches im2col order
    b2 = b
    if coutp != cout:
        w2 = jnp.pad(w2, ((0, 0), (0, coutp - cout)))
        b2 = jnp.pad(b2, (0, coutp - cout))

    lhs = patches.astype(jnp.bfloat16)            # bf16 MXU inputs, f32 accumulation
    rhs = w2.astype(jnp.bfloat16)
    b2 = b2.reshape(1, coutp).astype(jnp.float32)

    tm = _pick_tile(hw, 1024, 8)                  # HW tile (multiple of 8 or full)
    tk = _pick_tile(kq, 1152, 128)                # K tile (multiple of 128 or full)
    grid = (n, hw // tm, kq // tk)

    out = pl.pallas_call(
        _conv_matmul_kernel,
        out_shape=jax.ShapeDtypeStruct((n, hw, coutp), jnp.float32),
        grid_spec=pltpu.PrefetchScalarGridSpec(
            num_scalar_prefetch=0,
            grid=grid,
            in_specs=[
                pl.BlockSpec((1, tm, tk), lambda bi, mi, ki: (bi, mi, ki)),
                pl.BlockSpec((tk, coutp), lambda bi, mi, ki: (ki, 0)),
                pl.BlockSpec((1, coutp), lambda bi, mi, ki: (0, 0)),
            ],
            out_specs=pl.BlockSpec((1, tm, coutp), lambda bi, mi, ki: (bi, mi, 0)),
            scratch_shapes=[pltpu.VMEM((tm, coutp), jnp.float32)],
        ),
        compiler_params=pltpu.CompilerParams(
            dimension_semantics=("parallel", "parallel", "arbitrary"),
            vmem_limit_bytes=_VMEM_LIMIT),
    )(lhs, rhs, b2)

    out = out.reshape(n, ho, wo, coutp)
    if coutp != cout:
        out = out[..., :cout]
    return out


# ---------------------------------------------------------------------------
# Pallas loss kernel: class-balanced cross-entropy (losses_computer.loss)
# ---------------------------------------------------------------------------
def _wce_kernel(logits_ref, label_ref, coeff_ref, out_ref, *, num_classes):
    i = pl.program_id(0)
    m = pl.program_id(1)
    nm = pl.num_programs(1)

    logits = logits_ref[0]                        # (thw, Cp) f32
    label = label_ref[0]                          # (thw, Cp) f32 (pad channels are 0)
    coeff = coeff_ref[...]                        # (1, Cp)   (pad channels are 0)
    cp = logits.shape[-1]

    # Mask padded class lanes out of the log-sum-exp only.
    ch = jax.lax.broadcasted_iota(jnp.int32, (1, cp), 1)
    lm = jnp.where(ch < num_classes, logits, jnp.float32(-1e30))
    mx = jnp.max(lm, axis=-1, keepdims=True)
    lse = jnp.log(jnp.sum(jnp.exp(lm - mx), axis=-1, keepdims=True)) + mx   # (thw, 1)

    # F.cross_entropy with probability targets: sum_c t_c * (lse - logit_c)
    ce = lse * jnp.sum(label, axis=-1, keepdims=True) \
        - jnp.sum(label * logits, axis=-1, keepdims=True)

    # weight_map = coefficients[argmax(label)]; labels are strict one-hot so the
    # gather reduces to a single weighted lane reduction.
    wmap = jnp.sum(label * coeff, axis=-1, keepdims=True)

    out_ref[i * nm + m] = jnp.sum(ce * wmap)


def oasis_weighted_ce_loss(logits_nhwc, label_nhwc, opt):
    n, h, w, c = logits_nhwc.shape
    hw = h * w
    # get_class_balancing (opt.no_balancing_inloss == False, no dontcare label)
    occ = jnp.sum(label_nhwc, axis=(0, 1, 2))                               # (C,)
    num_of_classes = jnp.sum((occ > 0).astype(jnp.float32))
    numel = float(label_nhwc.size)
    coeff = numel / (occ * num_of_classes * float(c))
    # Absent classes are never the argmax of a one-hot label; zero them so the
    # in-kernel weighted reduction never sees inf.
    coeff = jnp.where(occ > 0, coeff, 0.0)

    cp = _round_up(c, 128)                        # lane-pad the class axis
    logits2 = logits_nhwc.reshape(n, hw, c).astype(jnp.float32)
    label2 = label_nhwc.reshape(n, hw, c).astype(jnp.float32)
    if cp != c:
        logits2 = jnp.pad(logits2, ((0, 0), (0, 0), (0, cp - c)))
        label2 = jnp.pad(label2, ((0, 0), (0, 0), (0, cp - c)))
        coeff = jnp.pad(coeff, (0, cp - c))
    coeff = coeff.reshape(1, cp).astype(jnp.float32)

    thw = _pick_tile(hw, 4096, 8)
    mt = hw // thw
    kernel = functools.partial(_wce_kernel, num_classes=c)
    partial = pl.pallas_call(
        kernel,
        out_shape=jax.ShapeDtypeStruct((n * mt,), jnp.float32),
        grid_spec=pltpu.PrefetchScalarGridSpec(
            num_scalar_prefetch=0,
            grid=(n, mt),
            in_specs=[
                pl.BlockSpec((1, thw, cp), lambda i, m: (i, m, 0)),
                pl.BlockSpec((1, thw, cp), lambda i, m: (i, m, 0)),
                pl.BlockSpec((1, cp), lambda i, m: (0, 0)),
            ],
            out_specs=pl.BlockSpec(memory_space=pltpu.SMEM),
        ),
        compiler_params=pltpu.CompilerParams(
            dimension_semantics=("arbitrary", "arbitrary"),
            vmem_limit_bytes=_VMEM_LIMIT),
    )(logits2, label2, coeff)
    return jnp.sum(partial) / float(n * h * w)


# ---------------------------------------------------------------------------
# Glue ops (memory-bound, plain JAX)
# ---------------------------------------------------------------------------
def avg_pool2(x):                                   # nn.AvgPool2d(2) on NHWC
    n, h, w, c = x.shape
    return x.reshape(n, h // 2, 2, w // 2, 2, c).mean(axis=(2, 4))


def upsample2_nearest(x):                           # nn.Upsample(scale_factor=2)
    return jnp.repeat(jnp.repeat(x, 2, axis=1), 2, axis=2)


# ---------------------------------------------------------------------------
# Parameter init (deterministic; init_weights: xavier_normal_(gain=0.02), bias 0)
# ---------------------------------------------------------------------------
def _xavier_conv(key, cout, cin, kh, kw, gain=0.02):
    fan_in = cin * kh * kw
    fan_out = cout * kh * kw
    std = gain * math.sqrt(2.0 / (fan_in + fan_out))
    w_oihw = jax.random.normal(key, (cout, cin, kh, kw), jnp.float32) * std
    return jnp.transpose(w_oihw, (2, 3, 1, 0))      # -> HWIO


def init_residual_block_d(key, fin, fout, up_or_down, first):
    k1, k2, k3 = jax.random.split(key, 3)
    p = dict(
        up_or_down=up_or_down, first=first, learned_shortcut=(fin != fout),
        conv1_w=_xavier_conv(k1, fout, fin, 3, 3),
        conv1_b=jnp.zeros((fout,), jnp.float32),
        conv2_w=_xavier_conv(k2, fout, fout, 3, 3),
        conv2_b=jnp.zeros((fout,), jnp.float32),
    )
    if p['learned_shortcut']:
        # OASIS conv_s has no bias; a zero bias is numerically identical.
        p['conv_s_w'] = _xavier_conv(k3, fout, fin, 1, 1)
        p['conv_s_b'] = jnp.zeros((fout,), jnp.float32)
    return p


def residual_block_d(p, x):
    up = p['up_or_down'] > 0
    down = p['up_or_down'] < 0
    # shortcut branch
    xs = x
    if p['first']:
        if down:
            xs = avg_pool2(xs)
        if p['learned_shortcut']:
            xs = conv2d(xs, p['conv_s_w'], p['conv_s_b'], padding=0)
    else:
        if up:
            xs = upsample2_nearest(xs)
        if p['learned_shortcut']:
            xs = conv2d(xs, p['conv_s_w'], p['conv_s_b'], padding=0)
        if down:
            xs = avg_pool2(xs)
    # main branch
    if p['first']:
        dx = conv2d(x, p['conv1_w'], p['conv1_b'], padding=1, pre_lrelu=False)
    else:
        h = upsample2_nearest(x) if up else x       # LeakyReLU commutes with nearest-up
        dx = conv2d(h, p['conv1_w'], p['conv1_b'], padding=1, pre_lrelu=True)
    dx = conv2d(dx, p['conv2_w'], p['conv2_b'], padding=1, pre_lrelu=True)
    if down:
        dx = avg_pool2(dx)
    return xs + dx


def init_discriminator(key, opt):
    channels = [3, 128, 128, 256, 256, 512, 512]
    nrb = opt.num_res_blocks
    keys = jax.random.split(key, 2 * nrb + 1)
    body_down, body_up = [], []
    for i in range(nrb):
        body_down.append(init_residual_block_d(
            keys[i], channels[i], channels[i + 1], -1, first=(i == 0)))
    body_up.append(init_residual_block_d(keys[nrb], channels[-1], channels[-2], 1, False))
    for i in range(1, nrb - 1):
        body_up.append(init_residual_block_d(
            keys[nrb + i], 2 * channels[-1 - i], channels[-2 - i], 1, False))
    body_up.append(init_residual_block_d(keys[2 * nrb - 1], 2 * channels[1], 64, 1, False))
    return dict(
        body_down=body_down, body_up=body_up,
        last_w=_xavier_conv(keys[2 * nrb], opt.semantic_nc, 64, 1, 1),
        last_b=jnp.zeros((opt.semantic_nc,), jnp.float32),
    )


def discriminator_forward(params, image_nhwc):
    x = image_nhwc
    encoder_res = []
    for p in params['body_down']:
        x = residual_block_d(p, x)
        encoder_res.append(x)
    x = residual_block_d(params['body_up'][0], x)
    for i in range(1, len(params['body_down'])):
        # TODO(synk): concat could be avoided by splitting the conv contraction
        # over the encoder/decoder channel halves (saves one HBM copy).
        x = residual_block_d(params['body_up'][i],
                             jnp.concatenate([encoder_res[-i - 1], x], axis=-1))
    return conv2d(x, params['last_w'], params['last_b'], padding=0)   # (N,H,W,semantic_nc)


# ---------------------------------------------------------------------------
# OASIS_model equivalent
# ---------------------------------------------------------------------------
class OASISModelPallas:
    def __init__(self, opt, key):
        self.opt = opt
        self.netD = init_discriminator(key, opt)
        # TODO(synk): netEMA deepcopy / load_checkpoints (.pth) / spectral-norm
        # power iteration omitted; weights are synthetic (no_spectral_norm=True).

    def forward(self, image_nchw, label_nchw, label_class_dict=None, mode='losses_D',
                losses_computer=None, **unused):
        if mode == 'losses_G':
            return (None, [None, None])
        if mode == 'losses_D':
            img = jnp.transpose(image_nchw, (0, 2, 3, 1)).astype(jnp.float32)
            lab = jnp.transpose(label_nchw, (0, 2, 3, 1)).astype(jnp.float32)
            output_d_real = discriminator_forward(self.netD, img)
            loss_d_real = oasis_weighted_ce_loss(output_d_real, lab, self.opt)
            loss_d = loss_d_real
            return (loss_d, [None, loss_d_real, None])
        raise ValueError(f"unknown mode {mode}")


# ---------------------------------------------------------------------------
if __name__ == "__main__":
    opt = Opt()
    key = jax.random.PRNGKey(0)
    k_params, k_img, k_lab = jax.random.split(key, 3)

    model = OASISModelPallas(opt, k_params)

    # Smallest spatial size consistent with 6 down / 6 up blocks (64 / 2**6 == 1).
    N, H, W = 2, 64, 64
    image = jax.random.normal(k_img, (N, 3, H, W), jnp.float32)          # NCHW
    lab_idx = jax.random.randint(k_lab, (N, H, W), 0, opt.semantic_nc)
    label = jnp.transpose(
        jax.nn.one_hot(lab_idx, opt.semantic_nc, dtype=jnp.float32), (0, 3, 1, 2))  # NCHW one-hot

    loss_d, losses = model.forward(image, label, None, 'losses_D', None)
    loss_d = jax.block_until_ready(loss_d)
    assert bool(jnp.isfinite(loss_d)), "loss is not finite"
    print("KERNEL_OK")
</pallas_src>

<mosaic_0001>
module attributes {stable_mosaic.version = 11 : i64} {
  func.func @_conv_matmul_kernel(%arg0: i32, %arg1: i32, %arg2: i32, %arg3: memref<1x1024x3xbf16, #tpu.memory_space<vmem>>, %arg4: memref<3x128xbf16, #tpu.memory_space<vmem>>, %arg5: memref<1x128xf32, #tpu.memory_space<vmem>>, %arg6: memref<1x1024x128xf32, #tpu.memory_space<vmem>>, %arg7: memref<1024x128xf32, #tpu.memory_space<vmem>>) attributes {dimension_semantics = [#tpu.dimension_semantics<parallel>, #tpu.dimension_semantics<parallel>, #tpu.dimension_semantics<arbitrary>], iteration_bounds = array<i64: 2, 1, 1>, scalar_prefetch = 0 : i64, scratch_operands = 1 : i64, tpu.core_type = #tpu.core_type<tc>, window_params = [{transform_indices = @transform_0, window_bounds = array<i64: 1, 1024, 3>}, {transform_indices = @transform_1, window_bounds = array<i64: 3, 128>}, {pipeline_mode = #tpu.pipeline_mode<synchronous>, transform_indices = @transform_2, window_bounds = array<i64: 1, 128>}, {transform_indices = @transform_3, window_bounds = array<i64: 1, 1024, 128>}]} {
    %c0_i32 = arith.constant 0 : i32
    %0 = arith.cmpi eq, %arg2, %c0_i32 : i32
    %1 = arith.extui %0 : i1 to i32
    %c0_i32_0 = arith.constant 0 : i32
    %2 = arith.cmpi ne, %1, %c0_i32_0 : i32
    scf.if %2 {
      %cst_11 = arith.constant 0.000000e+00 : f32
      %13 = vector.broadcast %cst_11 : f32 to vector<1024x128xf32>
      %c0_12 = arith.constant 0 : index
      %c0_13 = arith.constant 0 : index
      %14 = vector.load %arg7[%c0_12, %c0_13] : memref<1024x128xf32, #tpu.memory_space<vmem>>, vector<1024x128xf32>
      tpu.vector_store %arg7[%c0_12, %c0_13], %13 {strides = array<i32>} : memref<1024x128xf32, #tpu.memory_space<vmem>>, vector<1024x128xf32>,
    } else {
    }
    %c0 = arith.constant 0 : index
    %c0_1 = arith.constant 0 : index
    %3 = vector.load %arg7[%c0, %c0_1] : memref<1024x128xf32, #tpu.memory_space<vmem>>, vector<1024x128xf32>
    %c0_2 = arith.constant 0 : index
    %c0_3 = arith.constant 0 : index
    %c0_4 = arith.constant 0 : index
    %4 = vector.load %arg3[%c0_2, %c0_3, %c0_4] : memref<1x1024x3xbf16, #tpu.memory_space<vmem>>, vector<1x1024x3xbf16>
    %5 = vector.shape_cast %4 : vector<1x1024x3xbf16> to vector<1024x3xbf16>
    %c0_5 = arith.constant 0 : index
    %c0_6 = arith.constant 0 : index
    %6 = vector.load %arg4[%c0_5, %c0_6] : memref<3x128xbf16, #tpu.memory_space<vmem>>, vector<3x128xbf16>
    %cst = arith.constant dense<0.000000e+00> : vector<1024x128xf32>
    %7 = tpu.matmul %5, %6, %cst {dimension_numbers = #tpu.dot_dimension_numbers<[1], [0], [0], [1], [0, 0, 1, 1], [], []>} : vector<1024x3xbf16>, vector<3x128xbf16>, vector<1024x128xf32> -> vector<1024x128xf32>
    %8 = arith.addf %3, %7 : vector<1024x128xf32>
    %c0_7 = arith.constant 0 : index
    %c0_8 = arith.constant 0 : index
    %9 = vector.load %arg7[%c0_7, %c0_8] : memref<1024x128xf32, #tpu.memory_space<vmem>>, vector<1024x128xf32>
    tpu.vector_store %arg7[%c0_7, %c0_8], %8 {strides = array<i32>} : memref<1024x128xf32, #tpu.memory_space<vmem>>, vector<1024x128xf32>,
    %c0_i32_9 = arith.constant 0 : i32
    %10 = arith.cmpi eq, %arg2, %c0_i32_9 : i32
    %11 = arith.extui %10 : i1 to i32
    %c0_i32_10 = arith.constant 0 : i32
    %12 = arith.cmpi ne, %11, %c0_i32_10 : i32
    scf.if %12 {
      %c0_11 = arith.constant 0 : index
      %c0_12 = arith.constant 0 : index
      %13 = vector.load %arg7[%c0_11, %c0_12] : memref<1024x128xf32, #tpu.memory_space<vmem>>, vector<1024x128xf32>
      %c0_13 = arith.constant 0 : index
      %c0_14 = arith.constant 0 : index
      %14 = vector.load %arg5[%c0_13, %c0_14] : memref<1x128xf32, #tpu.memory_space<vmem>>, vector<1x128xf32>
      %15 = vector.broadcast %14 : vector<1x128xf32> to vector<1024x128xf32>
      %16 = arith.addf %13, %15 : vector<1024x128xf32>
      %c0_15 = arith.constant 0 : index
      %c0_16 = arith.constant 0 : index
      %c0_17 = arith.constant 0 : index
      %17 = vector.load %arg6[%c0_15, %c0_16, %c0_17] : memref<1x1024x128xf32, #tpu.memory_space<vmem>>, vector<1x1024x128xf32>
      %18 = vector.shape_cast %17 : vector<1x1024x128xf32> to vector<1024x128xf32>
      %19 = vector.shape_cast %16 : vector<1024x128xf32> to vector<1x1024x128xf32>
      tpu.vector_store %arg6[%c0_15, %c0_16, %c0_17], %19 {strides = array<i32>} : memref<1x1024x128xf32, #tpu.memory_space<vmem>>, vector<1x1024x128xf32>,
    } else {
    }
    return
  }
  func.func @transform_0(%arg0: i32, %arg1: i32, %arg2: i32) -> (i32, i32, i32) {
    %c0_i32 = arith.constant 0 : i32
    return %arg0, %arg1, %arg2 : i32, i32, i32
  }
  func.func @transform_1(%arg0: i32, %arg1: i32, %arg2: i32) -> (i32, i32) {
    %c0_i32 = arith.constant 0 : i32
    %c0_i32_0 = arith.constant 0 : i32
    return %arg2, %c0_i32 : i32, i32
  }
  func.func @transform_2(%arg0: i32, %arg1: i32, %arg2: i32) -> (i32, i32) {
    %c0_i32 = arith.constant 0 : i32
    %c0_i32_0 = arith.constant 0 : i32
    %c0_i32_1 = arith.constant 0 : i32
    return %c0_i32, %c0_i32_0 : i32, i32
  }
  func.func @transform_3(%arg0: i32, %arg1: i32, %arg2: i32) -> (i32, i32, i32) {
    %c0_i32 = arith.constant 0 : i32
    %c0_i32_0 = arith.constant 0 : i32
    return %arg0, %arg1, %c0_i32 : i32, i32, i32
  }
}

</mosaic_0001>

<bundles_post_ra>
// kernel: tpu_custom_call.1
= control target key start
LH: loop header
LB: loop body
LE: loop exit
PB: predicated region body
PF: predicated region fallthrough
CT: control target
= control target key end

     0   :  { %8 = vsyncpa [#allocation4], 0  ;;  %s3537_s0 = inlined_call_operand.vmem [shape: bf16[2,1024,3], index: 0, kind: input, shape index: {}]   ;;  %s3538_s1 = inlined_call_operand.vmem [shape: bf16[3,128], index: 1, kind: input, shape index: {}]   ;;  %s3539_s2 = inlined_call_operand.vmem [shape: f32[1,128], index: 2, kind: input, shape index: {}]   ;;  %s3540_s3 = inlined_call_operand.hbm [shape: f32[2,1024,128], index: 3, kind: output, shape index: {}]  }
   0x1   :  { %10 = vsyncpa [#allocation4 + $0x1], 0  ;;  %s3022_s12 = smov 0   ;;  %s3024_s13 = smov 0  }
   0x2   :  { %s3026_s14 = smov 0   ;;  %s3028_s15 = smov 0  }
   0x3   :  { %s3030_s16 = smov 0   ;;  %s3032_s17 = smov 0  }
   0x4 LB: > { %s2456_s18 = sadd.s32 4294967295, %s2996_s17   ;;  %s2457_s19 = sadd.s32 4294967294, %s2996_s17   ;;  %s2996_s17 = sphi %s3032_s17, %s16_s17   ;;  %s2992_s16 = sphi %s3030_s16, %s3547_s16   ;;  %s2988_s15 = sphi %s3028_s15, %s3546_s15   ;;  %s2984_s14 = sphi %s3026_s14, %s3545_s14   ;;  %s2980_s13 = sphi %s3024_s13, %s3544_s13   ;;  %s2976_s12 = sphi %s3022_s12, %s3543_s12  }
   0x5   : > { %s35_s20 = sadd.s32 1, %s2992_s16  ;;  %s121_s21 = sadd.s32 1, %s2984_s14 }
   0x6   : > { %p37_p0 = scmp.ge.s32.totalorder %s35_s20, 2  ;;  %p131_p1 = scmp.ne.s32.totalorder %s2984_s14, %s2980_s13 }
   0x7   : > { %p132_p2 = scmp.eq.s32.totalorder %s2456_s18, 1  ;;  %p137_p3 = scmp.ne.s32.totalorder %s2980_s13, %s2976_s12 }
   0x8   : > { %s3549_s20 = smov (%p37_p0, %s35_s20), 0  ;;  %p138_p5 = scmp.eq.s32.totalorder %s2457_s19, 1 }
   0x9   : > { %p3062_p4 = por %p132_p2, %p131_p1  ;;  %s116_s23 = ssub.s32 %s2992_s16, %s3549_s20 }
   0xa   : > { %p2461_p6 = scmp.ge.s32.totalorder %s2996_s17, 1  ;;  %p119_p7 = scmp.eq.s32.totalorder %s116_s23, 0 }
   0xb   : > { %p3069_p8 = por %p138_p5, %p137_p3  ;;  %p182_p9 = scmp.lt.s32.totalorder %s2996_s17, 3 }
   0xc   : > { %s3075_s25 = scalar_select %p119_p7, %s2984_s14, %s121_s21  }
   0xd   : > { %p183_p10 = pnand %p2461_p6, %p182_p9 }
   0xe   : > { %p218_p11 = scmp.lt.s32.totalorder (!%p183_p10), %s2988_s15, 1  ;;  %s214_s6 = sand.u32 (!%p183_p10), 1, %s2980_s13  }
   0xf   : > { %186 = sbr.rel (%p183_p10) target bundleno = 364 (0x16c), region = 32  ;;  %s2462_s7 = sshll.u32 (!%p183_p10), %s214_s6, 10 }
  0x10   : > { %s3225_s10 = scalar_lea.vmem (!%p183_p10), [#allocation3], %s2462_s7  ;;  %s2600_s11 = sshll.u32 (!%p183_p10), %s2988_s15, 14 }
  0x11   : > { %s2356_s18 = sshll.u32 (!%p183_p10), %s3225_s10, 4  ;;  %s3492_s23 = scalar_lea.sflag (!%p183_p10), [#allocation4], %s214_s6  ;;  %s3484_s18 = int_to_ptr.vmem [resolvable:$true] %s2356_s18 }
  0x12   : > { %s2920_s26 = scalar_lea.vmem (!%p183_p10), %s3484_s18, 16384  ;;  %s2999_s27 = smov (!%p183_p10), [#allocation3]  }
  0x13   : > { %p2921_p12 = scmp.ne.s32.totalorder (!%p183_p10), %s3484_s18, %s2920_s26 }
  0x14   : > { %v624_v0 = vld [vmem:[%s3538_s1] sm:$0x3]  ;;  %vm1138_vm0 = vcmask 1040384   ;;  %vm1139_vm1 = vcmask 1041408   ;;  %v2998_v1 = vmov 65535   ;;  %s219_s28 = scalar_select %p218_p11, %s2988_s15, 1 }
  0x15   : > { %v1140_v2 = vsel %vm1138_vm0, 4294967295, %v2998_v1  ;;  %vm945_vm2 = vcmask 23552   ;;  %s3482_s15 = scalar_lea.hbm %s3540_s3, %s2600_s11  ;;  %p2922_p13 = pnand %p2921_p12, %p3062_p4 }
  0x16   : > { %v1141_v3 = vsel %vm1139_vm1, %v1140_v2, 0  ;;  %s2599_s29 = sshll.u32 %s219_s28, 9  ;;  %s2924_s28 = sshll.u32 %s2999_s27, 4  ;;  %s2925_s28 = int_to_ptr.vmem [resolvable:$false] %s2924_s28 }
  0x17   : > { %v1143_v4 = vand.u32 %v1141_v3, %v624_v0  ;;  %s3085_s5 = scalar_lea.vmem %s3537_s0, %s2599_s29  ;;  %p2923_p0 = pneg %p2922_p13 }
  0x18   : > { %v2856_v5 = vld [vmem:[%s3085_s5] sm:$0xff]   ;;  %v2858_v7 = vld [vmem:[%s3085_s5 + $0x8] sm:$0xff]   ;;  %v2860_v9 = vld [vmem:[%s3085_s5 + $0x10] sm:$0xff]   ;;  %s2926_s29 = scalar_lea.vmem %s2925_s28, 32768  ;;  %p2927_p1 = scmp.lt.s32.totalorder %s3484_s18, %s2925_s28 }
  0x19   : > { %2666 = vmatprep.subr.bf16.mxu0 %v1143_v4  ;;  %2796 = vmatprep.subr.bf16.mxu1 %v1143_v4  ;;  %v2857_v6 = vld [vmem:[%s3085_s5 + $0x100] sm:$0xff]   ;;  %v2859_v8 = vld [vmem:[%s3085_s5 + $0x108] sm:$0xff]   ;;  %v2861_v10 = vld [vmem:[%s3085_s5 + $0x110] sm:$0xff]   ;;  %p2928_p2 = scmp.lt.s32.totalorder %s2926_s29, %s2920_s26 }
  0x1a   : > { %2667 = vmatpush3.bf16.msra.mxu0 %v1143_v4  ;;  %2797 = vmatpush3.bf16.msra.mxu1 %v1143_v4  ;;  %v2862_v11 = vld [vmem:[%s3085_s5 + $0x18] sm:$0xff]   ;;  %v2864_v13 = vld [vmem:[%s3085_s5 + $0x20] sm:$0xff]   ;;  %v2866_v15 = vld [vmem:[%s3085_s5 + $0x28] sm:$0xff]  }
  0x1b   : > { %2668 = vmatprep.mubr.msk.bf16.mxu0 %vm945_vm2, %v2856_v5  ;;  %2732 = vmatprep.mubr.msk.bf16.mxu1 %vm945_vm2, %v2857_v6  ;;  %v2863_v12 = vld [vmem:[%s3085_s5 + $0x118] sm:$0xff]   ;;  %v2865_v14 = vld [vmem:[%s3085_s5 + $0x120] sm:$0xff]   ;;  %v2867_v16 = vld [vmem:[%s3085_s5 + $0x128] sm:$0xff]   ;;  %p2929_p3 = por %p2928_p2, %p2927_p1 }
  0x1c   : > { %v2868_v17 = vld [vmem:[%s3085_s5 + $0x30] sm:$0xff]   ;;  %v2870_v19 = vld [vmem:[%s3085_s5 + $0x38] sm:$0xff]   ;;  %v2872_v21 = vld [vmem:[%s3085_s5 + $0x40] sm:$0xff]  }
  0x1d   : > { %2669 = vmatmul.mubr.msk.bf16.vlgmr.msra.gmra.mxu0 %vm945_vm2, %v2858_v7  ;;  %2733 = vmatmul.mubr.msk.bf16.vlgmr.msra.gmra.mxu1 %vm945_vm2, %v2859_v8  ;;  %v2869_v18 = vld [vmem:[%s3085_s5 + $0x130] sm:$0xff]   ;;  %v2871_v20 = vld [vmem:[%s3085_s5 + $0x138] sm:$0xff]   ;;  %v2873_v22 = vld [vmem:[%s3085_s5 + $0x140] sm:$0xff]   ;;  %p2930_p5 = pnand %p2929_p3, %p2923_p0 }
  0x1e   : > { %2672 = vmatprep.mubr.msk.bf16.mxu0 %vm945_vm2, %v2860_v9  ;;  %2736 = vmatprep.mubr.msk.bf16.mxu1 %vm945_vm2, %v2861_v10  ;;  %v2874_v23 = vld [vmem:[%s3085_s5 + $0x48] sm:$0xff]   ;;  %v2876_v25 = vld [vmem:[%s3085_s5 + $0x50] sm:$0xff]   ;;  %v2878_v27 = vld [vmem:[%s3085_s5 + $0x58] sm:$0xff]  }
  0x1f   : > { %v2875_v24 = vld [vmem:[%s3085_s5 + $0x148] sm:$0xff]   ;;  %v2877_v26 = vld [vmem:[%s3085_s5 + $0x150] sm:$0xff]   ;;  %v2879_v28 = vld [vmem:[%s3085_s5 + $0x158] sm:$0xff]  }
  0x20   : > { %v2880_v29 = vld [vmem:[%s3085_s5 + $0x60] sm:$0xff]   ;;  %v2882_v31 = vld [vmem:[%s3085_s5 + $0x68] sm:$0xff]   ;;  %v2884_v33 = vld [vmem:[%s3085_s5 + $0x70] sm:$0xff]  }
  0x21   : > { %v2881_v30 = vld [vmem:[%s3085_s5 + $0x160] sm:$0xff]   ;;  %v2883_v32 = vld [vmem:[%s3085_s5 + $0x168] sm:$0xff]   ;;  %v2885_v34 = vld [vmem:[%s3085_s5 + $0x170] sm:$0xff]  }
  0x22   : > { %v2886_v35 = vld [vmem:[%s3085_s5 + $0x78] sm:$0xff]   ;;  %v2888_v37 = vld [vmem:[%s3085_s5 + $0x80] sm:$0xff]   ;;  %v2890_v39 = vld [vmem:[%s3085_s5 + $0x88] sm:$0xff]  }
  0x23   : > { %v2887_v36 = vld [vmem:[%s3085_s5 + $0x178] sm:$0xff]   ;;  %v2889_v38 = vld [vmem:[%s3085_s5 + $0x180] sm:$0xff]   ;;  %v2891_v40 = vld [vmem:[%s3085_s5 + $0x188] sm:$0xff]  }
  0x24   : > { %v2892_v41 = vld [vmem:[%s3085_s5 + $0x90] sm:$0xff]   ;;  %v2894_v43 = vld [vmem:[%s3085_s5 + $0x98] sm:$0xff]   ;;  %v2896_v45 = vld [vmem:[%s3085_s5 + $0xa0] sm:$0xff]  }
  0x25   : > { %2673 = vmatmul.mubr.msk.bf16.gmra.mxu0 %vm945_vm2, %v2862_v11  ;;  %2737 = vmatmul.mubr.msk.bf16.gmra.mxu1 %vm945_vm2, %v2863_v12  ;;  %v2893_v42 = vld [vmem:[%s3085_s5 + $0x190] sm:$0xff]   ;;  %v2895_v44 = vld [vmem:[%s3085_s5 + $0x198] sm:$0xff]   ;;  %v2897_v46 = vld [vmem:[%s3085_s5 + $0x1a0] sm:$0xff]  }
  0x26   : > { %2676 = vmatprep.mubr.msk.bf16.mxu0 %vm945_vm2, %v2864_v13  ;;  %2740 = vmatprep.mubr.msk.bf16.mxu1 %vm945_vm2, %v2865_v14  ;;  %v2898_v47 = vld [vmem:[%s3085_s5 + $0xa8] sm:$0xff]   ;;  %v2900_v49 = vld [vmem:[%s3085_s5 + $0xb0] sm:$0xff]   ;;  %v2902_v51 = vld [vmem:[%s3085_s5 + $0xb8] sm:$0xff]  }
  0x27   : > { %v2899_v48 = vld [vmem:[%s3085_s5 + $0x1a8] sm:$0xff]   ;;  %v2901_v50 = vld [vmem:[%s3085_s5 + $0x1b0] sm:$0xff]   ;;  %v2903_v52 = vld [vmem:[%s3085_s5 + $0x1b8] sm:$0xff]  }
  0x28   : > { %v2904_v53 = vld [vmem:[%s3085_s5 + $0xc0] sm:$0xff]   ;;  %v2906_v55 = vld [vmem:[%s3085_s5 + $0xc8] sm:$0xff]   ;;  %v2908_v57 = vld [vmem:[%s3085_s5 + $0xd0] sm:$0xff]  }
  0x29   : > { %v2905_v54 = vld [vmem:[%s3085_s5 + $0x1c0] sm:$0xff]   ;;  %v2907_v56 = vld [vmem:[%s3085_s5 + $0x1c8] sm:$0xff]   ;;  %v2909_v58 = vld [vmem:[%s3085_s5 + $0x1d0] sm:$0xff]  }
  0x2a   : > { %v2910_v59 = vld [vmem:[%s3085_s5 + $0xd8] sm:$0xff]   ;;  %v2912_v61 = vld [vmem:[%s3085_s5 + $0xe0] sm:$0xff]   ;;  %v2914_v63 = vld [vmem:[%s3085_s5 + $0xe8] sm:$0xff]  }
  0x2b   : > { %v2911_v60 = vld [vmem:[%s3085_s5 + $0x1d8] sm:$0xff]   ;;  %v2913_v62 = vld [vmem:[%s3085_s5 + $0x1e0] sm:$0xff]   ;;  %v2915_v0 = vld [vmem:[%s3085_s5 + $0x1e8] sm:$0xff]  }
  0x2c   : > { %v2916_v1 = vld [vmem:[%s3085_s5 + $0xf0] sm:$0xff]   ;;  %v2918_v3 = vld [vmem:[%s3085_s5 + $0xf8] sm:$0xff]   ;;  %v3221_v5 = vld [vmem:[%s3539_s2] ss:$0 sm:$0xff] }
  0x2d   : > { %2677 = vmatmul.mubr.msk.bf16.gmra.mxu0 %vm945_vm2, %v2866_v15  ;;  %2741 = vmatmul.mubr.msk.bf16.gmra.mxu1 %vm945_vm2, %v2867_v16  ;;  %v2917_v2 = vld [vmem:[%s3085_s5 + $0x1f0] sm:$0xff]   ;;  %v2919_v4 = vld [vmem:[%s3085_s5 + $0x1f8] sm:$0xff]  }
  0x2e   : > { %2680 = vmatprep.mubr.msk.bf16.mxu0 %vm945_vm2, %v2868_v17  ;;  %2744 = vmatprep.mubr.msk.bf16.mxu1 %vm945_vm2, %v2869_v18 }
  0x35   : > { %2681 = vmatmul.mubr.msk.bf16.gmra.mxu0 %vm945_vm2, %v2870_v19  ;;  %2745 = vmatmul.mubr.msk.bf16.gmra.mxu1 %vm945_vm2, %v2871_v20 }
  0x36   : > { %2684 = vmatprep.mubr.msk.bf16.mxu0 %vm945_vm2, %v2872_v21  ;;  %2748 = vmatprep.mubr.msk.bf16.mxu1 %vm945_vm2, %v2873_v22 }
  0x3d   : > { %2685 = vmatmul.mubr.msk.bf16.gmra.mxu0 %vm945_vm2, %v2874_v23  ;;  %2749 = vmatmul.mubr.msk.bf16.gmra.mxu1 %vm945_vm2, %v2875_v24 }
  0x3e   : > { %2688 = vmatprep.mubr.msk.bf16.mxu0 %vm945_vm2, %v2876_v25  ;;  %2752 = vmatprep.mubr.msk.bf16.mxu1 %vm945_vm2, %v2877_v26 }
  0x45   : > { %2689 = vmatmul.mubr.msk.bf16.gmra.mxu0 %vm945_vm2, %v2878_v27  ;;  %2753 = vmatmul.mubr.msk.bf16.gmra.mxu1 %vm945_vm2, %v2879_v28 }
  0x46   : > { %2692 = vmatprep.mubr.msk.bf16.mxu0 %vm945_vm2, %v2880_v29  ;;  %2756 = vmatprep.mubr.msk.bf16.mxu1 %vm945_vm2, %v2881_v30 }
  0x4d   : > { %2693 = vmatmul.mubr.msk.bf16.gmra.mxu0 %vm945_vm2, %v2882_v31  ;;  %2757 = vmatmul.mubr.msk.bf16.gmra.mxu1 %vm945_vm2, %v2883_v32 }
  0x4e   : > { %2696 = vmatprep.mubr.msk.bf16.mxu0 %vm945_vm2, %v2884_v33  ;;  %2760 = vmatprep.mubr.msk.bf16.mxu1 %vm945_vm2, %v2885_v34 }
  0x55   : > { %2697 = vmatmul.mubr.msk.bf16.gmra.mxu0 %vm945_vm2, %v2886_v35  ;;  %2761 = vmatmul.mubr.msk.bf16.gmra.mxu1 %vm945_vm2, %v2887_v36 }
  0x56   : > { %2700 = vmatprep.mubr.msk.bf16.mxu0 %vm945_vm2, %v2888_v37  ;;  %2764 = vmatprep.mubr.msk.bf16.mxu1 %vm945_vm2, %v2889_v38 }
  0x5d   : > { %2701 = vmatmul.mubr.msk.bf16.gmra.mxu0 %vm945_vm2, %v2890_v39  ;;  %2765 = vmatmul.mubr.msk.bf16.gmra.mxu1 %vm945_vm2, %v2891_v40 }
  0x5e   : > { %2704 = vmatprep.mubr.msk.bf16.mxu0 %vm945_vm2, %v2892_v41  ;;  %2768 = vmatprep.mubr.msk.bf16.mxu1 %vm945_vm2, %v2893_v42 }
  0x65   : > { %2705 = vmatmul.mubr.msk.bf16.gmra.mxu0 %vm945_vm2, %v2894_v43  ;;  %2769 = vmatmul.mubr.msk.bf16.gmra.mxu1 %vm945_vm2, %v2895_v44 }
  0x66   : > { %2708 = vmatprep.mubr.msk.bf16.mxu0 %vm945_vm2, %v2896_v45  ;;  %2772 = vmatprep.mubr.msk.bf16.mxu1 %vm945_vm2, %v2897_v46 }
  0x6d   : > { %2709 = vmatmul.mubr.msk.bf16.gmra.mxu0 %vm945_vm2, %v2898_v47  ;;  %2773 = vmatmul.mubr.msk.bf16.gmra.mxu1 %vm945_vm2, %v2899_v48 }
  0x6e   : > { %2712 = vmatprep.mubr.msk.bf16.mxu0 %vm945_vm2, %v2900_v49  ;;  %2776 = vmatprep.mubr.msk.bf16.mxu1 %vm945_vm2, %v2901_v50 }
  0x75   : > { %2713 = vmatmul.mubr.msk.bf16.gmra.mxu0 %vm945_vm2, %v2902_v51  ;;  %2777 = vmatmul.mubr.msk.bf16.gmra.mxu1 %vm945_vm2, %v2903_v52 }
  0x76   : > { %2716 = vmatprep.mubr.msk.bf16.mxu0 %vm945_vm2, %v2904_v53  ;;  %2780 = vmatprep.mubr.msk.bf16.mxu1 %vm945_vm2, %v2905_v54 }
  0x7d   : > { %2717 = vmatmul.mubr.msk.bf16.gmra.mxu0 %vm945_vm2, %v2906_v55  ;;  %2781 = vmatmul.mubr.msk.bf16.gmra.mxu1 %vm945_vm2, %v2907_v56 }
  0x7e   : > { %2720 = vmatprep.mubr.msk.bf16.mxu0 %vm945_vm2, %v2908_v57  ;;  %2784 = vmatprep.mubr.msk.bf16.mxu1 %vm945_vm2, %v2909_v58 }
  0x85   : > { %2721 = vmatmul.mubr.msk.bf16.gmra.mxu0 %vm945_vm2, %v2910_v59  ;;  %2785 = vmatmul.mubr.msk.bf16.gmra.mxu1 %vm945_vm2, %v2911_v60 }
  0x86   : > { %2724 = vmatprep.mubr.msk.bf16.mxu0 %vm945_vm2, %v2912_v61  ;;  %2788 = vmatprep.mubr.msk.bf16.mxu1 %vm945_vm2, %v2913_v62 }
  0x8d   : > { %2725 = vmatmul.mubr.msk.bf16.gmra.mxu0 %vm945_vm2, %v2914_v63  ;;  %2789 = vmatmul.mubr.msk.bf16.gmra.mxu1 %vm945_vm2, %v2915_v0 }
  0x8e   : > { %2728 = vmatprep.mubr.msk.bf16.mxu0 %vm945_vm2, %v2916_v1  ;;  %2792 = vmatprep.mubr.msk.bf16.mxu1 %vm945_vm2, %v2917_v2 }
  0x95   : > { %2729 = vmatmul.mubr.msk.bf16.gmra.mxu0 %vm945_vm2, %v2918_v3  ;;  %2793 = vmatmul.mubr.msk.bf16.gmra.mxu1 %vm945_vm2, %v2919_v4 }
  0xdd   : > { %v2670_v6 = vpop.f32.mrf.mxu0  ;;  %v2734_v8 = vpop.f32.mrf.mxu1 }
  0xde   : > { %v2086_v7 = vadd.f32 %v2670_v6, %v3221_v5  ;;  %v2150_v9 = vadd.f32 %v2734_v8, %v3221_v5 }
  0xdf   : > { %v1179_v10 = vpop.f32.mrf.mxu0  ;;  %v1435_v12 = vpop.f32.mrf.mxu1 }
  0xe0   : > { %2214 = vst [vmem:[%s3225_s10 + $0x10] sm:$0xff] %v2086_v7  ;;  %v2084_v11 = vadd.f32 %v3221_v5, %v1179_v10  ;;  %2278 = vst [vmem:[%s3225_s10 + $0x210] sm:$0xff] %v2150_v9  ;;  %v2148_v13 = vadd.f32 %v3221_v5, %v1435_v12 }
  0xe1   : > { %v2671_v14 = vpop.f32.mrf.mxu0  ;;  %v2735_v16 = vpop.f32.mrf.mxu1 }
  0xe2   : > { %2212 = vst [vmem:[%s3225_s10] sm:$0xff] %v2084_v11  ;;  %v2087_v15 = vadd.f32 %v2671_v14, %v3221_v5  ;;  %2276 = vst [vmem:[%s3225_s10 + $0x200] sm:$0xff] %v2148_v13  ;;  %v2151_v17 = vadd.f32 %v2735_v16, %v3221_v5 }
  0xe3   : > { %v1182_v18 = vpop.f32.mrf.mxu0  ;;  %v1438_v20 = vpop.f32.mrf.mxu1 }
  0xe4   : > { %2215 = vst [vmem:[%s3225_s10 + $0x18] sm:$0xff] %v2087_v15  ;;  %v2085_v19 = vadd.f32 %v3221_v5, %v1182_v18  ;;  %2279 = vst [vmem:[%s3225_s10 + $0x218] sm:$0xff] %v2151_v17  ;;  %v2149_v21 = vadd.f32 %v3221_v5, %v1438_v20 }
  0xe5   : > { %v2674_v22 = vpop.f32.mrf.mxu0  ;;  %v2738_v24 = vpop.f32.mrf.mxu1 }
  0xe6   : > { %2213 = vst [vmem:[%s3225_s10 + $0x8] sm:$0xff] %v2085_v19  ;;  %v2090_v23 = vadd.f32 %v2674_v22, %v3221_v5  ;;  %2277 = vst [vmem:[%s3225_s10 + $0x208] sm:$0xff] %v2149_v21  ;;  %v2154_v25 = vadd.f32 %v2738_v24, %v3221_v5 }
  0xe7   : > { %v1195_v26 = vpop.f32.mrf.mxu0  ;;  %v1451_v28 = vpop.f32.mrf.mxu1 }
  0xe8   : > { %2218 = vst [vmem:[%s3225_s10 + $0x30] sm:$0xff] %v2090_v23  ;;  %v2088_v27 = vadd.f32 %v3221_v5, %v1195_v26  ;;  %2282 = vst [vmem:[%s3225_s10 + $0x230] sm:$0xff] %v2154_v25  ;;  %v2152_v29 = vadd.f32 %v3221_v5, %v1451_v28 }
  0xe9   : > { %v2675_v30 = vpop.f32.mrf.mxu0  ;;  %v2739_v32 = vpop.f32.mrf.mxu1 }
  0xea   : > { %2216 = vst [vmem:[%s3225_s10 + $0x20] sm:$0xff] %v2088_v27  ;;  %v2091_v31 = vadd.f32 %v2675_v30, %v3221_v5  ;;  %2280 = vst [vmem:[%s3225_s10 + $0x220] sm:$0xff] %v2152_v29  ;;  %v2155_v33 = vadd.f32 %v2739_v32, %v3221_v5 }
  0xeb   : > { %v1198_v34 = vpop.f32.mrf.mxu0  ;;  %v1454_v36 = vpop.f32.mrf.mxu1 }
  0xec   : > { %2219 = vst [vmem:[%s3225_s10 + $0x38] sm:$0xff] %v2091_v31  ;;  %v2089_v35 = vadd.f32 %v3221_v5, %v1198_v34  ;;  %2283 = vst [vmem:[%s3225_s10 + $0x238] sm:$0xff] %v2155_v33  ;;  %v2153_v37 = vadd.f32 %v3221_v5, %v1454_v36 }
  0xed   : > { %v2678_v38 = vpop.f32.mrf.mxu0  ;;  %v2742_v40 = vpop.f32.mrf.mxu1 }
  0xee   : > { %2217 = vst [vmem:[%s3225_s10 + $0x28] sm:$0xff] %v2089_v35  ;;  %v2094_v39 = vadd.f32 %v2678_v38, %v3221_v5  ;;  %2281 = vst [vmem:[%s3225_s10 + $0x228] sm:$0xff] %v2153_v37  ;;  %v2158_v41 = vadd.f32 %v2742_v40, %v3221_v5 }
  0xef   : > { %v1211_v42 = vpop.f32.mrf.mxu0  ;;  %v1467_v44 = vpop.f32.mrf.mxu1 }
  0xf0   : > { %2222 = vst [vmem:[%s3225_s10 + $0x50] sm:$0xff] %v2094_v39  ;;  %v2092_v43 = vadd.f32 %v3221_v5, %v1211_v42  ;;  %2286 = vst [vmem:[%s3225_s10 + $0x250] sm:$0xff] %v2158_v41  ;;  %v2156_v45 = vadd.f32 %v3221_v5, %v1467_v44 }
  0xf1   : > { %v2679_v46 = vpop.f32.mrf.mxu0  ;;  %v2743_v48 = vpop.f32.mrf.mxu1 }
  0xf2   : > { %2220 = vst [vmem:[%s3225_s10 + $0x40] sm:$0xff] %v2092_v43  ;;  %v2095_v47 = vadd.f32 %v2679_v46, %v3221_v5  ;;  %2284 = vst [vmem:[%s3225_s10 + $0x240] sm:$0xff] %v2156_v45  ;;  %v2159_v49 = vadd.f32 %v2743_v48, %v3221_v5 }
  0xf3   : > { %v1214_v50 = vpop.f32.mrf.mxu0  ;;  %v1470_v52 = vpop.f32.mrf.mxu1 }
  0xf4   : > { %2223 = vst [vmem:[%s3225_s10 + $0x58] sm:$0xff] %v2095_v47  ;;  %v2093_v51 = vadd.f32 %v3221_v5, %v1214_v50  ;;  %2287 = vst [vmem:[%s3225_s10 + $0x258] sm:$0xff] %v2159_v49  ;;  %v2157_v53 = vadd.f32 %v3221_v5, %v1470_v52 }
  0xf5   : > { %v2682_v54 = vpop.f32.mrf.mxu0  ;;  %v2746_v56 = vpop.f32.mrf.mxu1 }
  0xf6   : > { %2221 = vst [vmem:[%s3225_s10 + $0x48] sm:$0xff] %v2093_v51  ;;  %v2098_v55 = vadd.f32 %v2682_v54, %v3221_v5  ;;  %2285 = vst [vmem:[%s3225_s10 + $0x248] sm:$0xff] %v2157_v53  ;;  %v2162_v57 = vadd.f32 %v2746_v56, %v3221_v5 }
  0xf7   : > { %v1227_v58 = vpop.f32.mrf.mxu0  ;;  %v1483_v60 = vpop.f32.mrf.mxu1 }
  0xf8   : > { %2226 = vst [vmem:[%s3225_s10 + $0x70] sm:$0xff] %v2098_v55  ;;  %v2096_v59 = vadd.f32 %v3221_v5, %v1227_v58  ;;  %2290 = vst [vmem:[%s3225_s10 + $0x270] sm:$0xff] %v2162_v57  ;;  %v2160_v61 = vadd.f32 %v3221_v5, %v1483_v60 }
  0xf9   : > { %v2683_v62 = vpop.f32.mrf.mxu0  ;;  %v2747_v0 = vpop.f32.mrf.mxu1 }
  0xfa   : > { %2224 = vst [vmem:[%s3225_s10 + $0x60] sm:$0xff] %v2096_v59  ;;  %v2099_v63 = vadd.f32 %v2683_v62, %v3221_v5  ;;  %2288 = vst [vmem:[%s3225_s10 + $0x260] sm:$0xff] %v2160_v61  ;;  %v2163_v1 = vadd.f32 %v2747_v0, %v3221_v5 }
  0xfb   : > { %v1230_v2 = vpop.f32.mrf.mxu0  ;;  %v1486_v4 = vpop.f32.mrf.mxu1 }
  0xfc   : > { %2227 = vst [vmem:[%s3225_s10 + $0x78] sm:$0xff] %v2099_v63  ;;  %v2097_v3 = vadd.f32 %v3221_v5, %v1230_v2  ;;  %2291 = vst [vmem:[%s3225_s10 + $0x278] sm:$0xff] %v2163_v1  ;;  %v2161_v6 = vadd.f32 %v3221_v5, %v1486_v4 }
  0xfd   : > { %v2686_v7 = vpop.f32.mrf.mxu0  ;;  %v2750_v9 = vpop.f32.mrf.mxu1 }
  0xfe   : > { %2225 = vst [vmem:[%s3225_s10 + $0x68] sm:$0xff] %v2097_v3  ;;  %v2102_v8 = vadd.f32 %v2686_v7, %v3221_v5  ;;  %2289 = vst [vmem:[%s3225_s10 + $0x268] sm:$0xff] %v2161_v6  ;;  %v2166_v10 = vadd.f32 %v2750_v9, %v3221_v5 }
  0xff   : > { %v1243_v11 = vpop.f32.mrf.mxu0  ;;  %v1499_v13 = vpop.f32.mrf.mxu1 }
 0x100   : > { %2230 = vst [vmem:[%s3225_s10 + $0x90] sm:$0xff] %v2102_v8  ;;  %v2100_v12 = vadd.f32 %v3221_v5, %v1243_v11  ;;  %2294 = vst [vmem:[%s3225_s10 + $0x290] sm:$0xff] %v2166_v10  ;;  %v2164_v14 = vadd.f32 %v3221_v5, %v1499_v13 }
 0x101   : > { %v2687_v15 = vpop.f32.mrf.mxu0  ;;  %v2751_v17 = vpop.f32.mrf.mxu1 }
 0x102   : > { %2228 = vst [vmem:[%s3225_s10 + $0x80] sm:$0xff] %v2100_v12  ;;  %v2103_v16 = vadd.f32 %v2687_v15, %v3221_v5  ;;  %2292 = vst [vmem:[%s3225_s10 + $0x280] sm:$0xff] %v2164_v14  ;;  %v2167_v18 = vadd.f32 %v2751_v17, %v3221_v5 }
 0x103   : > { %v1246_v19 = vpop.f32.mrf.mxu0  ;;  %v1502_v21 = vpop.f32.mrf.mxu1 }
 0x104   : > { %2231 = vst [vmem:[%s3225_s10 + $0x98] sm:$0xff] %v2103_v16  ;;  %v2101_v20 = vadd.f32 %v3221_v5, %v1246_v19  ;;  %2295 = vst [vmem:[%s3225_s10 + $0x298] sm:$0xff] %v2167_v18  ;;  %v2165_v22 = vadd.f32 %v3221_v5, %v1502_v21 }
 0x105   : > { %v2690_v23 = vpop.f32.mrf.mxu0  ;;  %v2754_v25 = vpop.f32.mrf.mxu1 }
 0x106   : > { %2229 = vst [vmem:[%s3225_s10 + $0x88] sm:$0xff] %v2101_v20  ;;  %v2106_v24 = vadd.f32 %v2690_v23, %v3221_v5  ;;  %2293 = vst [vmem:[%s3225_s10 + $0x288] sm:$0xff] %v2165_v22  ;;  %v2170_v26 = vadd.f32 %v2754_v25, %v3221_v5 }
 0x107   : > { %v1259_v27 = vpop.f32.mrf.mxu0  ;;  %v1515_v29 = vpop.f32.mrf.mxu1 }
 0x108   : > { %2234 = vst [vmem:[%s3225_s10 + $0xb0] sm:$0xff] %v2106_v24  ;;  %v2104_v28 = vadd.f32 %v3221_v5, %v1259_v27  ;;  %2298 = vst [vmem:[%s3225_s10 + $0x2b0] sm:$0xff] %v2170_v26  ;;  %v2168_v30 = vadd.f32 %v3221_v5, %v1515_v29 }
 0x109   : > { %v2691_v31 = vpop.f32.mrf.mxu0  ;;  %v2755_v33 = vpop.f32.mrf.mxu1 }
 0x10a   : > { %2232 = vst [vmem:[%s3225_s10 + $0xa0] sm:$0xff] %v2104_v28  ;;  %v2107_v32 = vadd.f32 %v2691_v31, %v3221_v5  ;;  %2296 = vst [vmem:[%s3225_s10 + $0x2a0] sm:$0xff] %v2168_v30  ;;  %v2171_v34 = vadd.f32 %v2755_v33, %v3221_v5 }
 0x10b   : > { %v1262_v35 = vpop.f32.mrf.mxu0  ;;  %v1518_v37 = vpop.f32.mrf.mxu1 }
 0x10c   : > { %2235 = vst [vmem:[%s3225_s10 + $0xb8] sm:$0xff] %v2107_v32  ;;  %v2105_v36 = vadd.f32 %v3221_v5, %v1262_v35  ;;  %2299 = vst [vmem:[%s3225_s10 + $0x2b8] sm:$0xff] %v2171_v34  ;;  %v2169_v38 = vadd.f32 %v3221_v5, %v1518_v37 }
 0x10d   : > { %v2694_v39 = vpop.f32.mrf.mxu0  ;;  %v2758_v41 = vpop.f32.mrf.mxu1 }
 0x10e   : > { %2233 = vst [vmem:[%s3225_s10 + $0xa8] sm:$0xff] %v2105_v36  ;;  %v2110_v40 = vadd.f32 %v2694_v39, %v3221_v5  ;;  %2297 = vst [vmem:[%s3225_s10 + $0x2a8] sm:$0xff] %v2169_v38  ;;  %v2174_v42 = vadd.f32 %v2758_v41, %v3221_v5 }
 0x10f   : > { %v1275_v43 = vpop.f32.mrf.mxu0  ;;  %v1531_v45 = vpop.f32.mrf.mxu1 }
 0x110   : > { %2238 = vst [vmem:[%s3225_s10 + $0xd0] sm:$0xff] %v2110_v40  ;;  %v2108_v44 = vadd.f32 %v3221_v5, %v1275_v43  ;;  %2302 = vst [vmem:[%s3225_s10 + $0x2d0] sm:$0xff] %v2174_v42  ;;  %v2172_v46 = vadd.f32 %v3221_v5, %v1531_v45 }
 0x111   : > { %v2695_v47 = vpop.f32.mrf.mxu0  ;;  %v2759_v49 = vpop.f32.mrf.mxu1 }
 0x112   : > { %2236 = vst [vmem:[%s3225_s10 + $0xc0] sm:$0xff] %v2108_v44  ;;  %v2111_v48 = vadd.f32 %v2695_v47, %v3221_v5  ;;  %2300 = vst [vmem:[%s3225_s10 + $0x2c0] sm:$0xff] %v2172_v46  ;;  %v2175_v50 = vadd.f32 %v2759_v49, %v3221_v5 }
 0x113   : > { %v1278_v51 = vpop.f32.mrf.mxu0  ;;  %v1534_v53 = vpop.f32.mrf.mxu1 }
 0x114   : > { %2239 = vst [vmem:[%s3225_s10 + $0xd8] sm:$0xff] %v2111_v48  ;;  %v2109_v52 = vadd.f32 %v3221_v5, %v1278_v51  ;;  %2303 = vst [vmem:[%s3225_s10 + $0x2d8] sm:$0xff] %v2175_v50  ;;  %v2173_v54 = vadd.f32 %v3221_v5, %v1534_v53 }
 0x115   : > { %v2698_v55 = vpop.f32.mrf.mxu0  ;;  %v2762_v57 = vpop.f32.mrf.mxu1 }
 0x116   : > { %2237 = vst [vmem:[%s3225_s10 + $0xc8] sm:$0xff] %v2109_v52  ;;  %v2114_v56 = vadd.f32 %v2698_v55, %v3221_v5  ;;  %2301 = vst [vmem:[%s3225_s10 + $0x2c8] sm:$0xff] %v2173_v54  ;;  %v2178_v58 = vadd.f32 %v2762_v57, %v3221_v5 }
 0x117   : > { %v1291_v59 = vpop.f32.mrf.mxu0  ;;  %v1547_v61 = vpop.f32.mrf.mxu1 }
 0x118   : > { %2242 = vst [vmem:[%s3225_s10 + $0xf0] sm:$0xff] %v2114_v56  ;;  %v2112_v60 = vadd.f32 %v3221_v5, %v1291_v59  ;;  %2306 = vst [vmem:[%s3225_s10 + $0x2f0] sm:$0xff] %v2178_v58  ;;  %v2176_v62 = vadd.f32 %v3221_v5, %v1547_v61 }
 0x119   : > { %v2699_v63 = vpop.f32.mrf.mxu0  ;;  %v2763_v1 = vpop.f32.mrf.mxu1 }
 0x11a   : > { %2240 = vst [vmem:[%s3225_s10 + $0xe0] sm:$0xff] %v2112_v60  ;;  %v2115_v0 = vadd.f32 %v2699_v63, %v3221_v5  ;;  %2304 = vst [vmem:[%s3225_s10 + $0x2e0] sm:$0xff] %v2176_v62  ;;  %v2179_v2 = vadd.f32 %v2763_v1, %v3221_v5 }
 0x11b   : > { %v1294_v3 = vpop.f32.mrf.mxu0  ;;  %v1550_v6 = vpop.f32.mrf.mxu1 }
 0x11c   : > { %2243 = vst [vmem:[%s3225_s10 + $0xf8] sm:$0xff] %v2115_v0  ;;  %v2113_v4 = vadd.f32 %v3221_v5, %v1294_v3  ;;  %2307 = vst [vmem:[%s3225_s10 + $0x2f8] sm:$0xff] %v2179_v2  ;;  %v2177_v7 = vadd.f32 %v3221_v5, %v1550_v6 }
 0x11d   : > { %v2702_v8 = vpop.f32.mrf.mxu0  ;;  %v2766_v10 = vpop.f32.mrf.mxu1 }
 0x11e   : > { %2241 = vst [vmem:[%s3225_s10 + $0xe8] sm:$0xff] %v2113_v4  ;;  %v2118_v9 = vadd.f32 %v2702_v8, %v3221_v5  ;;  %2305 = vst [vmem:[%s3225_s10 + $0x2e8] sm:$0xff] %v2177_v7  ;;  %v2182_v11 = vadd.f32 %v2766_v10, %v3221_v5 }
 0x11f   : > { %v1307_v12 = vpop.f32.mrf.mxu0  ;;  %v1563_v14 = vpop.f32.mrf.mxu1 }
 0x120   : > { %2246 = vst [vmem:[%s3225_s10 + $0x110] sm:$0xff] %v2118_v9  ;;  %v2116_v13 = vadd.f32 %v3221_v5, %v1307_v12  ;;  %2310 = vst [vmem:[%s3225_s10 + $0x310] sm:$0xff] %v2182_v11  ;;  %v2180_v15 = vadd.f32 %v3221_v5, %v1563_v14 }
 0x121   : > { %v2703_v16 = vpop.f32.mrf.mxu0  ;;  %v2767_v18 = vpop.f32.mrf.mxu1 }
 0x122   : > { %2244 = vst [vmem:[%s3225_s10 + $0x100] sm:$0xff] %v2116_v13  ;;  %v2119_v17 = vadd.f32 %v2703_v16, %v3221_v5  ;;  %2308 = vst [vmem:[%s3225_s10 + $0x300] sm:$0xff] %v2180_v15  ;;  %v2183_v19 = vadd.f32 %v2767_v18, %v3221_v5 }
 0x123   : > { %v1310_v20 = vpop.f32.mrf.mxu0  ;;  %v1566_v22 = vpop.f32.mrf.mxu1 }
 0x124   : > { %2247 = vst [vmem:[%s3225_s10 + $0x118] sm:$0xff] %v2119_v17  ;;  %v2117_v21 = vadd.f32 %v3221_v5, %v1310_v20  ;;  %2311 = vst [vmem:[%s3225_s10 + $0x318] sm:$0xff] %v2183_v19  ;;  %v2181_v23 = vadd.f32 %v3221_v5, %v1566_v22 }
 0x125   : > { %v2706_v24 = vpop.f32.mrf.mxu0  ;;  %v2770_v26 = vpop.f32.mrf.mxu1 }
 0x126   : > { %2245 = vst [vmem:[%s3225_s10 + $0x108] sm:$0xff] %v2117_v21  ;;  %v2122_v25 = vadd.f32 %v2706_v24, %v3221_v5  ;;  %2309 = vst [vmem:[%s3225_s10 + $0x308] sm:$0xff] %v2181_v23  ;;  %v2186_v27 = vadd.f32 %v2770_v26, %v3221_v5 }
 0x127   : > { %v1323_v28 = vpop.f32.mrf.mxu0  ;;  %v1579_v30 = vpop.f32.mrf.mxu1 }
 0x128   : > { %2250 = vst [vmem:[%s3225_s10 + $0x130] sm:$0xff] %v2122_v25  ;;  %v2120_v29 = vadd.f32 %v3221_v5, %v1323_v28  ;;  %2314 = vst [vmem:[%s3225_s10 + $0x330] sm:$0xff] %v2186_v27  ;;  %v2184_v31 = vadd.f32 %v3221_v5, %v1579_v30 }
 0x129   : > { %v2707_v32 = vpop.f32.mrf.mxu0  ;;  %v2771_v34 = vpop.f32.mrf.mxu1 }
 0x12a   : > { %2248 = vst [vmem:[%s3225_s10 + $0x120] sm:$0xff] %v2120_v29  ;;  %v2123_v33 = vadd.f32 %v2707_v32, %v3221_v5  ;;  %2312 = vst [vmem:[%s3225_s10 + $0x320] sm:$0xff] %v2184_v31  ;;  %v2187_v35 = vadd.f32 %v2771_v34, %v3221_v5 }
 0x12b   : > { %v1326_v36 = vpop.f32.mrf.mxu0  ;;  %v1582_v38 = vpop.f32.mrf.mxu1 }
 0x12c   : > { %2251 = vst [vmem:[%s3225_s10 + $0x138] sm:$0xff] %v2123_v33  ;;  %v2121_v37 = vadd.f32 %v3221_v5, %v1326_v36  ;;  %2315 = vst [vmem:[%s3225_s10 + $0x338] sm:$0xff] %v2187_v35  ;;  %v2185_v39 = vadd.f32 %v3221_v5, %v1582_v38 }
 0x12d   : > { %v2710_v40 = vpop.f32.mrf.mxu0  ;;  %v2774_v42 = vpop.f32.mrf.mxu1 }
 0x12e   : > { %2249 = vst [vmem:[%s3225_s10 + $0x128] sm:$0xff] %v2121_v37  ;;  %v2126_v41 = vadd.f32 %v2710_v40, %v3221_v5  ;;  %2313 = vst [vmem:[%s3225_s10 + $0x328] sm:$0xff] %v2185_v39  ;;  %v2190_v43 = vadd.f32 %v2774_v42, %v3221_v5 }
 0x12f   : > { %v1339_v44 = vpop.f32.mrf.mxu0  ;;  %v1595_v46 = vpop.f32.mrf.mxu1 }
 0x130   : > { %2254 = vst [vmem:[%s3225_s10 + $0x150] sm:$0xff] %v2126_v41  ;;  %v2124_v45 = vadd.f32 %v3221_v5, %v1339_v44  ;;  %2318 = vst [vmem:[%s3225_s10 + $0x350] sm:$0xff] %v2190_v43  ;;  %v2188_v47 = vadd.f32 %v3221_v5, %v1595_v46 }
 0x131   : > { %v2711_v48 = vpop.f32.mrf.mxu0  ;;  %v2775_v50 = vpop.f32.mrf.mxu1 }
 0x132   : > { %2252 = vst [vmem:[%s3225_s10 + $0x140] sm:$0xff] %v2124_v45  ;;  %v2127_v49 = vadd.f32 %v2711_v48, %v3221_v5  ;;  %2316 = vst [vmem:[%s3225_s10 + $0x340] sm:$0xff] %v2188_v47  ;;  %v2191_v51 = vadd.f32 %v2775_v50, %v3221_v5 }
 0x133   : > { %v1342_v52 = vpop.f32.mrf.mxu0  ;;  %v1598_v54 = vpop.f32.mrf.mxu1 }
 0x134   : > { %2255 = vst [vmem:[%s3225_s10 + $0x158] sm:$0xff] %v2127_v49  ;;  %v2125_v53 = vadd.f32 %v3221_v5, %v1342_v52  ;;  %2319 = vst [vmem:[%s3225_s10 + $0x358] sm:$0xff] %v2191_v51  ;;  %v2189_v55 = vadd.f32 %v3221_v5, %v1598_v54 }
 0x135   : > { %v2714_v56 = vpop.f32.mrf.mxu0  ;;  %v2778_v58 = vpop.f32.mrf.mxu1 }
 0x136   : > { %2253 = vst [vmem:[%s3225_s10 + $0x148] sm:$0xff] %v2125_v53  ;;  %v2130_v57 = vadd.f32 %v2714_v56, %v3221_v5  ;;  %2317 = vst [vmem:[%s3225_s10 + $0x348] sm:$0xff] %v2189_v55  ;;  %v2194_v59 = vadd.f32 %v2778_v58, %v3221_v5 }
 0x137   : > { %v1355_v60 = vpop.f32.mrf.mxu0  ;;  %v1611_v62 = vpop.f32.mrf.mxu1 }
 0x138   : > { %2258 = vst [vmem:[%s3225_s10 + $0x170] sm:$0xff] %v2130_v57  ;;  %v2128_v61 = vadd.f32 %v3221_v5, %v1355_v60  ;;  %2322 = vst [vmem:[%s3225_s10 + $0x370] sm:$0xff] %v2194_v59  ;;  %v2192_v63 = vadd.f32 %v3221_v5, %v1611_v62 }
 0x139   : > { %v2715_v0 = vpop.f32.mrf.mxu0  ;;  %v2779_v2 = vpop.f32.mrf.mxu1 }
 0x13a   : > { %2256 = vst [vmem:[%s3225_s10 + $0x160] sm:$0xff] %v2128_v61  ;;  %v2131_v1 = vadd.f32 %v2715_v0, %v3221_v5  ;;  %2320 = vst [vmem:[%s3225_s10 + $0x360] sm:$0xff] %v2192_v63  ;;  %v2195_v3 = vadd.f32 %v2779_v2, %v3221_v5 }
 0x13b   : > { %v1358_v4 = vpop.f32.mrf.mxu0  ;;  %v1614_v7 = vpop.f32.mrf.mxu1 }
 0x13c   : > { %2259 = vst [vmem:[%s3225_s10 + $0x178] sm:$0xff] %v2131_v1  ;;  %v2129_v6 = vadd.f32 %v3221_v5, %v1358_v4  ;;  %2323 = vst [vmem:[%s3225_s10 + $0x378] sm:$0xff] %v2195_v3  ;;  %v2193_v8 = vadd.f32 %v3221_v5, %v1614_v7 }
 0x13d   : > { %v2718_v9 = vpop.f32.mrf.mxu0  ;;  %v2782_v11 = vpop.f32.mrf.mxu1 }
 0x13e   : > { %2257 = vst [vmem:[%s3225_s10 + $0x168] sm:$0xff] %v2129_v6  ;;  %v2134_v10 = vadd.f32 %v2718_v9, %v3221_v5  ;;  %2321 = vst [vmem:[%s3225_s10 + $0x368] sm:$0xff] %v2193_v8  ;;  %v2198_v12 = vadd.f32 %v2782_v11, %v3221_v5 }
 0x13f   : > { %v1371_v13 = vpop.f32.mrf.mxu0  ;;  %v1627_v15 = vpop.f32.mrf.mxu1 }
 0x140   : > { %2262 = vst [vmem:[%s3225_s10 + $0x190] sm:$0xff] %v2134_v10  ;;  %v2132_v14 = vadd.f32 %v3221_v5, %v1371_v13  ;;  %2326 = vst [vmem:[%s3225_s10 + $0x390] sm:$0xff] %v2198_v12  ;;  %v2196_v16 = vadd.f32 %v3221_v5, %v1627_v15 }
 0x141   : > { %v2719_v17 = vpop.f32.mrf.mxu0  ;;  %v2783_v19 = vpop.f32.mrf.mxu1 }
 0x142   : > { %2260 = vst [vmem:[%s3225_s10 + $0x180] sm:$0xff] %v2132_v14  ;;  %v2135_v18 = vadd.f32 %v2719_v17, %v3221_v5  ;;  %2324 = vst [vmem:[%s3225_s10 + $0x380] sm:$0xff] %v2196_v16  ;;  %v2199_v20 = vadd.f32 %v2783_v19, %v3221_v5 }
 0x143   : > { %v1374_v21 = vpop.f32.mrf.mxu0  ;;  %v1630_v23 = vpop.f32.mrf.mxu1 }
 0x144   : > { %2263 = vst [vmem:[%s3225_s10 + $0x198] sm:$0xff] %v2135_v18  ;;  %v2133_v22 = vadd.f32 %v3221_v5, %v1374_v21  ;;  %2327 = vst [vmem:[%s3225_s10 + $0x398] sm:$0xff] %v2199_v20  ;;  %v2197_v24 = vadd.f32 %v3221_v5, %v1630_v23 }
 0x145   : > { %v2722_v25 = vpop.f32.mrf.mxu0  ;;  %v2786_v27 = vpop.f32.mrf.mxu1 }
 0x146   : > { %2261 = vst [vmem:[%s3225_s10 + $0x188] sm:$0xff] %v2133_v22  ;;  %v2138_v26 = vadd.f32 %v2722_v25, %v3221_v5  ;;  %2325 = vst [vmem:[%s3225_s10 + $0x388] sm:$0xff] %v2197_v24  ;;  %v2202_v28 = vadd.f32 %v2786_v27, %v3221_v5 }
 0x147   : > { %v1387_v29 = vpop.f32.mrf.mxu0  ;;  %v1643_v31 = vpop.f32.mrf.mxu1 }
 0x148   : > { %2266 = vst [vmem:[%s3225_s10 + $0x1b0] sm:$0xff] %v2138_v26  ;;  %v2136_v30 = vadd.f32 %v3221_v5, %v1387_v29  ;;  %2330 = vst [vmem:[%s3225_s10 + $0x3b0] sm:$0xff] %v2202_v28  ;;  %v2200_v32 = vadd.f32 %v3221_v5, %v1643_v31 }
 0x149   : > { %v2723_v33 = vpop.f32.mrf.mxu0  ;;  %v2787_v35 = vpop.f32.mrf.mxu1 }
 0x14a   : > { %2264 = vst [vmem:[%s3225_s10 + $0x1a0] sm:$0xff] %v2136_v30  ;;  %v2139_v34 = vadd.f32 %v2723_v33, %v3221_v5  ;;  %2328 = vst [vmem:[%s3225_s10 + $0x3a0] sm:$0xff] %v2200_v32  ;;  %v2203_v36 = vadd.f32 %v2787_v35, %v3221_v5 }
 0x14b   : > { %v1390_v37 = vpop.f32.mrf.mxu0  ;;  %v1646_v39 = vpop.f32.mrf.mxu1 }
 0x14c   : > { %2267 = vst [vmem:[%s3225_s10 + $0x1b8] sm:$0xff] %v2139_v34  ;;  %v2137_v38 = vadd.f32 %v3221_v5, %v1390_v37  ;;  %2331 = vst [vmem:[%s3225_s10 + $0x3b8] sm:$0xff] %v2203_v36  ;;  %v2201_v40 = vadd.f32 %v3221_v5, %v1646_v39 }
 0x14d   : > { %v2726_v41 = vpop.f32.mrf.mxu0  ;;  %v2790_v43 = vpop.f32.mrf.mxu1 }
 0x14e   : > { %2265 = vst [vmem:[%s3225_s10 + $0x1a8] sm:$0xff] %v2137_v38  ;;  %v2142_v42 = vadd.f32 %v2726_v41, %v3221_v5  ;;  %2329 = vst [vmem:[%s3225_s10 + $0x3a8] sm:$0xff] %v2201_v40  ;;  %v2206_v44 = vadd.f32 %v2790_v43, %v3221_v5 }
 0x14f   : > { %v1403_v45 = vpop.f32.mrf.mxu0  ;;  %v1659_v47 = vpop.f32.mrf.mxu1 }
 0x150   : > { %2270 = vst [vmem:[%s3225_s10 + $0x1d0] sm:$0xff] %v2142_v42  ;;  %v2140_v46 = vadd.f32 %v3221_v5, %v1403_v45  ;;  %2334 = vst [vmem:[%s3225_s10 + $0x3d0] sm:$0xff] %v2206_v44  ;;  %v2204_v48 = vadd.f32 %v3221_v5, %v1659_v47 }
 0x151   : > { %v2727_v49 = vpop.f32.mrf.mxu0  ;;  %v2791_v51 = vpop.f32.mrf.mxu1 }
 0x152   : > { %2268 = vst [vmem:[%s3225_s10 + $0x1c0] sm:$0xff] %v2140_v46  ;;  %v2143_v50 = vadd.f32 %v2727_v49, %v3221_v5  ;;  %2332 = vst [vmem:[%s3225_s10 + $0x3c0] sm:$0xff] %v2204_v48  ;;  %v2207_v52 = vadd.f32 %v2791_v51, %v3221_v5 }
 0x153   : > { %v1406_v53 = vpop.f32.mrf.mxu0  ;;  %v1662_v55 = vpop.f32.mrf.mxu1 }
 0x154   : > { %2271 = vst [vmem:[%s3225_s10 + $0x1d8] sm:$0xff] %v2143_v50  ;;  %v2141_v54 = vadd.f32 %v3221_v5, %v1406_v53  ;;  %2335 = vst [vmem:[%s3225_s10 + $0x3d8] sm:$0xff] %v2207_v52  ;;  %v2205_v56 = vadd.f32 %v3221_v5, %v1662_v55 }
 0x155   : > { %v2730_v57 = vpop.f32.mrf.mxu0  ;;  %v2794_v59 = vpop.f32.mrf.mxu1 }
 0x156   : > { %2269 = vst [vmem:[%s3225_s10 + $0x1c8] sm:$0xff] %v2141_v54  ;;  %v2146_v58 = vadd.f32 %v2730_v57, %v3221_v5  ;;  %2333 = vst [vmem:[%s3225_s10 + $0x3c8] sm:$0xff] %v2205_v56  ;;  %v2210_v60 = vadd.f32 %v2794_v59, %v3221_v5 }
 0x157   : > { %v1419_v61 = vpop.f32.mrf.mxu0  ;;  %v1675_v63 = vpop.f32.mrf.mxu1 }
 0x158   : > { %2274 = vst [vmem:[%s3225_s10 + $0x1f0] sm:$0xff] %v2146_v58  ;;  %v2144_v62 = vadd.f32 %v3221_v5, %v1419_v61  ;;  %2338 = vst [vmem:[%s3225_s10 + $0x3f0] sm:$0xff] %v2210_v60  ;;  %v2208_v0 = vadd.f32 %v3221_v5, %v1675_v63 }
 0x159   : > { %v2731_v1 = vpop.f32.mrf.mxu0  ;;  %v2795_v3 = vpop.f32.mrf.mxu1 }
 0x15a   : > { %2272 = vst [vmem:[%s3225_s10 + $0x1e0] sm:$0xff] %v2144_v62  ;;  %v2147_v2 = vadd.f32 %v2731_v1, %v3221_v5  ;;  %2336 = vst [vmem:[%s3225_s10 + $0x3e0] sm:$0xff] %v2208_v0  ;;  %v2211_v4 = vadd.f32 %v2795_v3, %v3221_v5 }
 0x15b   : > { %v1422_v6 = vpop.f32.mrf.mxu0  ;;  %v1678_v8 = vpop.f32.mrf.mxu1 }
 0x15c   : > { %2275 = vst [vmem:[%s3225_s10 + $0x1f8] sm:$0xff] %v2147_v2  ;;  %v2145_v7 = vadd.f32 %v3221_v5, %v1422_v6  ;;  %2339 = vst [vmem:[%s3225_s10 + $0x3f8] sm:$0xff] %v2211_v4  ;;  %v2209_v9 = vadd.f32 %v3221_v5, %v1678_v8 }
 0x15e   : > { %2273 = vst [vmem:[%s3225_s10 + $0x1e8] sm:$0xff] %v2145_v7  ;;  %2337 = vst [vmem:[%s3225_s10 + $0x3e8] sm:$0xff] %v2209_v9 }
 0x15f   : > { %2933 = shalt.err (!%p2930_p5)
}
 0x160   : > { %s2934_s30 = scalar_lea.hbm %s3482_s15, 16384  ;;  %s2938_s6 = scalar_lea.hbm %s3540_s3, 32768 }
 0x161   : > { %p2935_p6 = scmp.ne.s32.totalorder %s3482_s15, %s2934_s30  ;;  %p2939_p10 = scmp.lt.s32.totalorder %s3482_s15, %s3540_s3 }
 0x162   : > { %p2940_p11 = scmp.lt.s32.totalorder %s2938_s6, %s2934_s30 }
 0x163   : > { %p2936_p7 = pnand %p2935_p6, %p3062_p4 }
 0x164   : > { %p2941_p12 = por %p2940_p11, %p2939_p10 }
 0x165   : > { %p2937_p9 = pneg %p2936_p7 }
 0x167   : > { %p2942_p13 = pnand %p2941_p12, %p2937_p9 }
 0x169   : > { %2945 = shalt.err (!%p2942_p13)
}
 0x16a   : > { %s3000_s9 = smov 128   ;;  %s3001_s10 = smov 8  }
 0x16b   : > { %2798 = dma.vmem_to_hbm [thread:$0]  (%p3062_p4), %s3484_s18, 16384, %s3482_s15, %s3492_s23, %s3000_s9, %s3000_s9, %s3001_s10  }
 0x16c PF: > { %p2804_p0 = scmp.ge.s32.totalorder %s2996_s17, 2  ;;  %s2371_s11 = sand.u32 1, %s2976_s12  }
 0x16d   : > { %s2372_s19 = scalar_lea.sflag [#allocation4], %s2371_s11 }
 0x16e   : > { %p2801_p1 = pnand %p2804_p0, %p3069_p8 }
 0x170   : > { %p2802_p2 = pneg %p2801_p1 }
 0x172   : > { %2971 = dma.done.wait (%p2802_p2), %s2372_s19, 16384  }
 0x173   : > { %2973 = vsyncadd (%p2802_p2), %s2372_s19, 4294950912  ;;  %s16_s17 = sadd.s32 1, %s2996_s17   ;;  %s3543_s12 = smov %s2980_s13 }
 0x174   : > { %p13_p3 = scmp.ge.s32.totalorder %s16_s17, 4   ;;  %s3544_s13 = smov %s2984_s14 }
 0x175   : > { %s3545_s14 = smov %s3075_s25  ;;  %s3546_s15 = smov %s2992_s16 }
 0x176   : > { %s3547_s16 = smov %s3549_s20  ;;  %15 = sbr.rel (!%p13_p3) target bundleno = 4 (0x4), region = 78 }
 0x17b   :  { %2377 = vsyncpa [#allocation4], 1 }
 0x17c   :  { %2379 = vsyncpa [#allocation4 + $0x1], 1 }

</bundles_post_ra>
